<compile_context>
chip_gen: v5e
topology: v5e:2x2
jax: 0.10.0
libtpu: 0.0.40
codegen_flags: <defaults>
</compile_context>

<pallas_src>
import functools

import jax
import jax.numpy as jnp
from jax.experimental import pallas as pl
from jax.experimental.pallas import tpu as pltpu


def _round_up(x, m):
    return (x + m - 1) // m * m


# ----------------- gate-table precompute kernel: G = embed @ W_ih + b_ih (V, 3H) ----------

def _gate_table_kernel(e_ref, w_ref, b_ref, o_ref):
    """e: (rn, H); w: (H, 3H); b: (1, 3H); o: (rn, 3H) -- single fused lane-dense matmul."""
    o_ref[...] = (jnp.dot(e_ref[...], w_ref[...], preferred_element_type=jnp.float32)
                  + b_ref[...]).astype(o_ref.dtype)


def gate_table_pallas(embed, w_ih, b_ih, *, rows=512):
    V, H = embed.shape
    H3 = w_ih.shape[1]
    rn = min(rows, V)
    return pl.pallas_call(
        _gate_table_kernel,
        out_shape=jax.ShapeDtypeStruct((V, H3), jnp.float32),
        grid_spec=pltpu.PrefetchScalarGridSpec(
            num_scalar_prefetch=0,
            grid=(pl.cdiv(V, rn),),
            in_specs=[
                pl.BlockSpec((rn, H), lambda i: (i, 0)),
                pl.BlockSpec((H, H3), lambda i: (0, 0)),
                pl.BlockSpec((1, H3), lambda i: (0, 0)),
            ],
            out_specs=pl.BlockSpec((rn, H3), lambda i: (i, 0)),
        ),
        compiler_params=pltpu.CompilerParams(dimension_semantics=("parallel",)),
    )(embed, w_ih, b_ih)


def precompute_gate_tables(params):
    """Eval-mode fold of the input-side GRU matmul into the embedding table (once per weights)."""
    prepared = {}
    for name in ("encoder", "decoder"):
        p = params[name]
        q = {k: v for k, v in p.items() if k not in ("embed", "w_ih", "b_ih")}
        q["gate_tbl"] = gate_table_pallas(p["embed"], p["w_ih"], p["b_ih"])
        prepared[name] = q
    return prepared


# ------------------------------------- GRU recurrence kernel ------------------------------

def _gru_kernel(gi_ref, len_ref, whh_ref, bhh_ref, h0_ref, *rest, tc, hidden, emit_seq):
    """One grid step == one batch tile x one chunk of `tc` timesteps.

    gi_ref : (tc, bt, 3H) gathered gate-table rows (x@W_ih + b_ih), time-major, gates (r,z,n)
    len_ref: (bt, 1)      int32 sequence lengths (resident)
    whh_ref: (H, 3H)      concatenated hidden->hidden weights (resident)
    bhh_ref: (1, 3H)      concatenated hidden->hidden bias (resident)
    h0_ref : (bt, H)      initial hidden state for this batch tile
    outputs: [out_ref (bt, tc, H) batch-major if emit_seq], hid_ref (bt, H)
    scratch: h_scr (bt, H) hidden state carried across chunks
    """
    if emit_seq:
        out_ref, hid_ref, h_scr = rest
    else:
        hid_ref, h_scr = rest

    c = pl.program_id(1)                                   # chunk index (time axis)

    @pl.when(c == 0)
    def _():
        h_scr[...] = h0_ref[...]

    w_hh = whh_ref[...]                                    # (H, 3H) resident, loaded once/chunk
    b_hh = bhh_ref[...]                                    # (1, 3H)
    lens = len_ref[...]                                    # (bt, 1) int32
    H = hidden
    t0 = c * tc

    h = h_scr[...]                                         # (bt, H)
    for i in range(tc):                                    # statically unrolled chunk
        # Single fused MXU dot per step (was 3 per-gate dots), then lane-slice the gates.
        gh = jnp.dot(h, w_hh, preferred_element_type=jnp.float32) + b_hh   # (bt, 3H)
        gi = gi_ref[i]                                                      # (bt, 3H)
        r = jax.nn.sigmoid(gi[:, 0:H] + gh[:, 0:H])
        z = jax.nn.sigmoid(gi[:, H:2 * H] + gh[:, H:2 * H])
        n = jnp.tanh(gi[:, 2 * H:3 * H] + r * gh[:, 2 * H:3 * H])
        h_new = (1.0 - z) * n + z * h
        valid = lens > (t0 + i)                            # (bt, 1) in-kernel mask (no HBM mask)
        h = jnp.where(valid, h_new, h)                     # freeze past sequence end
        if emit_seq:
            # Batch-major write: kills the XLA (T,B,H)->(B,T,H) transpose before the projection.
            out_ref[:, i, :] = jnp.where(valid, h_new, 0.0).astype(out_ref.dtype)
    h_scr[...] = h

    @pl.when(c == pl.num_programs(1) - 1)                  # write final hidden once
    def _():
        hid_ref[...] = h.astype(hid_ref.dtype)


def gru_pallas(gi, lens, w_hh, b_hh, h0, *, tc, emit_seq):
    """gi: (Tp, Bp, 3H) time-major; lens: (Bp, 1) int32; h0: (Bp, H)."""
    Tp, Bp, H3 = gi.shape
    H = h0.shape[-1]
    # Split batch into two >=8-row tiles when possible so v7x megacore can shard the serial
    # recurrence ("parallel" batch axis); harmless (n_bt=1) on the small test / 1-TC chips.
    n_bt = 2 if (Bp >= 16 and Bp % 16 == 0) else 1
    bt = Bp // n_bt
    n_chunks = Tp // tc
    kernel = functools.partial(_gru_kernel, tc=tc, hidden=H, emit_seq=emit_seq)

    in_specs = [
        pl.BlockSpec((tc, bt, H3), lambda b, c: (c, b, 0)),   # gi chunk (lane-dense 3H)
        pl.BlockSpec((bt, 1), lambda b, c: (b, 0)),           # lengths  (resident)
        pl.BlockSpec((H, H3), lambda b, c: (0, 0)),           # W_hh     (resident)
        pl.BlockSpec((1, H3), lambda b, c: (0, 0)),           # b_hh     (resident)
        pl.BlockSpec((bt, H), lambda b, c: (b, 0)),           # h0       (resident)
    ]
    if emit_seq:
        out_shape = (jax.ShapeDtypeStruct((Bp, Tp, H), jnp.float32),   # batch-major sequence
                     jax.ShapeDtypeStruct((Bp, H), jnp.float32))       # final hidden
        out_specs = (pl.BlockSpec((bt, tc, H), lambda b, c: (b, c, 0)),
                     pl.BlockSpec((bt, H), lambda b, c: (b, 0)))
    else:
        out_shape = jax.ShapeDtypeStruct((Bp, H), jnp.float32)
        out_specs = pl.BlockSpec((bt, H), lambda b, c: (b, 0))

    return pl.pallas_call(
        kernel,
        out_shape=out_shape,
        grid_spec=pltpu.PrefetchScalarGridSpec(
            num_scalar_prefetch=0,
            grid=(n_bt, n_chunks),
            in_specs=in_specs,
            out_specs=out_specs,
            scratch_shapes=[pltpu.VMEM((bt, H), jnp.float32)],
        ),
        compiler_params=pltpu.CompilerParams(
            dimension_semantics=("parallel", "arbitrary")),   # batch parallel, time sequential
    )(gi, lens, w_hh, b_hh, h0)


# ----------------------------- projection + log_softmax kernel ----------------------------

def _proj_logsoftmax_kernel(x_ref, w_ref, b_ref, o_ref):
    """x: (rn, H), w: (H, V), b: (1, V) -> o: (rn, V) = log_softmax(x@w + b)."""
    logits = jnp.dot(x_ref[...], w_ref[...], preferred_element_type=jnp.float32) + b_ref[...]
    m = jnp.max(logits, axis=-1, keepdims=True)
    s = logits - m
    lse = jnp.log(jnp.sum(jnp.exp(s), axis=-1, keepdims=True))
    o_ref[...] = (s - lse).astype(o_ref.dtype)


def proj_logsoftmax_pallas(x, w, b, *, rows=512):
    N, H = x.shape
    V = w.shape[1]
    rn = min(rows, N)
    return pl.pallas_call(
        _proj_logsoftmax_kernel,
        out_shape=jax.ShapeDtypeStruct((N, V), jnp.float32),
        grid_spec=pltpu.PrefetchScalarGridSpec(
            num_scalar_prefetch=0,
            grid=(pl.cdiv(N, rn),),
            in_specs=[
                pl.BlockSpec((rn, H), lambda i: (i, 0)),
                pl.BlockSpec((H, V), lambda i: (0, 0)),
                pl.BlockSpec((1, V), lambda i: (0, 0)),
            ],
            out_specs=pl.BlockSpec((rn, V), lambda i: (i, 0)),
        ),
        compiler_params=pltpu.CompilerParams(dimension_semantics=("parallel",)),
    )(x, w, b)


# ---------------------------------------- full forward ------------------------------------

def _gru_stage(gate_tbl, w_hh, b_hh, tokens, lengths, h0, *, tc, emit_seq):
    """Token gather of precomputed input gates -> masked GRU.  tokens: (B, T), h0: (B, H)."""
    B, T = tokens.shape
    H = w_hh.shape[0]
    Bp = _round_up(B, 8)          # sublane-align batch
    Tp = _round_up(T, tc)         # time padded to chunk multiple

    tok = jnp.zeros((Tp, Bp), jnp.int32).at[:T, :B].set(tokens.T.astype(jnp.int32))
    # Eval-mode fold: gi(token) = embed[token] @ W_ih + b_ih == gate_tbl[token].
    gi = jnp.take(gate_tbl, tok, axis=0)                                  # (Tp, Bp, 3H)

    lens = jnp.zeros((Bp, 1), jnp.int32).at[:B, 0].set(lengths.astype(jnp.int32))
    h0p = jnp.zeros((Bp, H), jnp.float32).at[:B].set(h0.astype(jnp.float32))

    res = gru_pallas(gi, lens, w_hh, b_hh, h0p, tc=tc, emit_seq=emit_seq)
    if emit_seq:
        out_bm, h_last = res                                              # (Bp, Tp, H), (Bp, H)
        return out_bm[:B, :T], h_last[:B]
    return None, res[:B]


def _seq2seq_static(params, x, x_lengths, y, y_lengths, *, tc):
    """Static-shape (jittable) PlainSeq2Seq forward over the full padded T."""
    enc, dec = params["encoder"], params["decoder"]
    B = x.shape[0]
    H = enc["w_hh"].shape[0]

    # PlainEncoder: embedding gates -> packed GRU -> final hidden (encoder_out unused).
    _, h_enc = _gru_stage(enc["gate_tbl"], enc["w_hh"], enc["b_hh"],
                          x, x_lengths, jnp.zeros((B, H), jnp.float32),
                          tc=tc, emit_seq=False)

    # PlainDecoder: embedding gates -> packed GRU (init = encoder hid) -> linear -> log_softmax.
    out_bm, h_dec = _gru_stage(dec["gate_tbl"], dec["w_hh"], dec["b_hh"],
                               y, y_lengths, h_enc, tc=tc, emit_seq=True)

    By, Ty = y.shape
    logp = proj_logsoftmax_pallas(out_bm.reshape(By * Ty, H), dec["w_out"], dec["b_out"])
    V = dec["w_out"].shape[1]
    return logp.reshape(By, Ty, V), h_dec[None]


_seq2seq_jit = jax.jit(functools.partial(_seq2seq_static, tc=32))


def plain_seq2seq_forward(prepared_params, x, x_lengths, y, y_lengths):
    """PlainSeq2Seq.forward: returns (log_probs[(B, max(y_lengths), V)], None)."""
    logp_full, _hid = _seq2seq_jit(prepared_params, x, x_lengths, y, y_lengths)
    # pad_packed_sequence truncation; done host-side OUTSIDE jit so the kernels compile once.
    t_max = int(jnp.max(y_lengths))
    return logp_full[:, :t_max], None


# ------------------------------------ pure-JAX reference ----------------------------------

def _gru_ref(gi_tm, mask_tm, h0, w_hh, b_hh):
    H = h0.shape[-1]

    def step(h, inp):
        gi, m = inp
        gh = h @ w_hh + b_hh[0]
        r = jax.nn.sigmoid(gi[:, 0:H] + gh[:, 0:H])
        z = jax.nn.sigmoid(gi[:, H:2 * H] + gh[:, H:2 * H])
        n = jnp.tanh(gi[:, 2 * H:3 * H] + r * gh[:, 2 * H:3 * H])
        h_new = (1.0 - z) * n + z * h
        h_upd = m * h_new + (1.0 - m) * h
        return h_upd, m * h_new

    h_last, out_tm = jax.lax.scan(step, h0, (gi_tm, mask_tm))
    return out_tm, h_last


def reference_forward(params, x, x_lengths, y, y_lengths):
    enc, dec = params["encoder"], params["decoder"]
    B, Tx = x.shape
    H = enc["w_hh"].shape[0]

    embx = jnp.take(enc["embed"], x.T, axis=0).astype(jnp.float32)        # (Tx, B, H)
    gix = embx @ enc["w_ih"] + enc["b_ih"][0]
    mx = (jnp.arange(Tx)[:, None, None] < x_lengths[None, :, None]).astype(jnp.float32)
    _, h_enc = _gru_ref(gix, mx, jnp.zeros((B, H), jnp.float32), enc["w_hh"], enc["b_hh"])

    _, Ty = y.shape
    emby = jnp.take(dec["embed"], y.T, axis=0).astype(jnp.float32)
    giy = emby @ dec["w_ih"] + dec["b_ih"][0]
    my = (jnp.arange(Ty)[:, None, None] < y_lengths[None, :, None]).astype(jnp.float32)
    out_tm, h_dec = _gru_ref(giy, my, h_enc, dec["w_hh"], dec["b_hh"])

    out_bt = jnp.transpose(out_tm, (1, 0, 2))
    logits = out_bt @ dec["w_out"] + dec["b_out"][0]
    return jax.nn.log_softmax(logits, axis=-1), h_dec[None]


# ---------------------------------------------- main --------------------------------------

if __name__ == "__main__":
    H = 32                 # hidden size
    V_SRC, V_TGT = 48, 64  # source / target vocab
    B = 4                  # batch
    TX, TY = 10, 8         # padded source / target lengths

    key = jax.random.PRNGKey(0)
    ks = jax.random.split(key, 16)
    s = float(1.0 / (H ** 0.5))

    def u(k, shape):
        return jax.random.uniform(k, shape, jnp.float32, -s, s)

    # GRU weights concatenated over gates (r, z, n): w_ih/w_hh are (H, 3H), biases (1, 3H).
    # w_ih[:, g*H:(g+1)*H] corresponds to PyTorch weight_ih_l0[g*H:(g+1)*H].T.
    params = {
        "encoder": {
            "embed": jax.random.normal(ks[0], (V_SRC, H), jnp.float32) * 0.1,
            "w_ih": u(ks[1], (H, 3 * H)), "b_ih": u(ks[2], (1, 3 * H)),
            "w_hh": u(ks[3], (H, 3 * H)), "b_hh": u(ks[4], (1, 3 * H)),
        },
        "decoder": {
            "embed": jax.random.normal(ks[5], (V_TGT, H), jnp.float32) * 0.1,
            "w_ih": u(ks[6], (H, 3 * H)), "b_ih": u(ks[7], (1, 3 * H)),
            "w_hh": u(ks[8], (H, 3 * H)), "b_hh": u(ks[9], (1, 3 * H)),
            "w_out": u(ks[10], (H, V_TGT)), "b_out": u(ks[11], (1, V_TGT)),
        },
    }

    x = jax.random.randint(ks[12], (B, TX), 0, V_SRC, dtype=jnp.int32)
    x_lengths = jnp.array([10, 7, 9, 4], dtype=jnp.int32)
    y = jax.random.randint(ks[13], (B, TY), 0, V_TGT, dtype=jnp.int32)
    y_lengths = jnp.array([8, 5, 3, 6], dtype=jnp.int32)

    # One-time weight prep (eval-mode fold of the input-gate matmul into the embedding).
    prepared = precompute_gate_tables(params)
    prepared = jax.block_until_ready(prepared)

    # Run the Pallas forward (jitted, static shapes) and block.
    logp_full, hid = _seq2seq_jit(prepared, x, x_lengths, y, y_lengths)
    logp_full = jax.block_until_ready(logp_full)
    hid = jax.block_until_ready(hid)

    out, attn = plain_seq2seq_forward(prepared, x, x_lengths, y, y_lengths)
    out = jax.block_until_ready(out)
    t_max = int(jnp.max(y_lengths))

    # Check against the pure-JAX reference.
    logp_ref, hid_ref = reference_forward(params, x, x_lengths, y, y_lengths)
    assert out.shape == (B, t_max, V_TGT)
    assert attn is None
    assert hid.shape == (1, B, H)
    assert jnp.allclose(out, logp_ref[:, :t_max], atol=2e-3, rtol=2e-3)
    assert jnp.allclose(hid, hid_ref, atol=2e-3, rtol=2e-3)

    print("KERNEL_OK")
</pallas_src>

<mosaic_0001>
module attributes {stable_mosaic.version = 11 : i64} {
  func.func @_gate_table_kernel(%arg0: i32, %arg1: memref<48x32xf32, #tpu.memory_space<vmem>>, %arg2: memref<32x96xf32, #tpu.memory_space<vmem>>, %arg3: memref<1x96xf32, #tpu.memory_space<vmem>>, %arg4: memref<48x96xf32, #tpu.memory_space<vmem>>) attributes {dimension_semantics = [#tpu.dimension_semantics<parallel>], iteration_bounds = array<i64: 1>, scalar_prefetch = 0 : i64, scratch_operands = 0 : i64, tpu.core_type = #tpu.core_type<tc>, window_params = [{transform_indices = @transform_0, window_bounds = array<i64: 48, 32>}, {pipeline_mode = #tpu.pipeline_mode<synchronous>, transform_indices = @transform_1, window_bounds = array<i64: 32, 96>}, {pipeline_mode = #tpu.pipeline_mode<synchronous>, transform_indices = @transform_2, window_bounds = array<i64: 1, 96>}, {transform_indices = @transform_3, window_bounds = array<i64: 48, 96>}]} {
    %c0 = arith.constant 0 : index
    %c0_0 = arith.constant 0 : index
    %0 = vector.load %arg1[%c0, %c0_0] : memref<48x32xf32, #tpu.memory_space<vmem>>, vector<48x32xf32>
    %c0_1 = arith.constant 0 : index
    %c0_2 = arith.constant 0 : index
    %1 = vector.load %arg2[%c0_1, %c0_2] : memref<32x96xf32, #tpu.memory_space<vmem>>, vector<32x96xf32>
    %cst = arith.constant dense<0.000000e+00> : vector<48x96xf32>
    %2 = tpu.matmul %0, %1, %cst {dimension_numbers = #tpu.dot_dimension_numbers<[1], [0], [0], [1], [0, 0, 1, 1], [], []>} : vector<48x32xf32>, vector<32x96xf32>, vector<48x96xf32> -> vector<48x96xf32>
    %c0_3 = arith.constant 0 : index
    %c0_4 = arith.constant 0 : index
    %3 = vector.load %arg3[%c0_3, %c0_4] : memref<1x96xf32, #tpu.memory_space<vmem>>, vector<1x96xf32>
    %4 = vector.broadcast %3 : vector<1x96xf32> to vector<48x96xf32>
    %5 = arith.addf %2, %4 : vector<48x96xf32>
    %c0_5 = arith.constant 0 : index
    %c0_6 = arith.constant 0 : index
    %6 = vector.load %arg4[%c0_5, %c0_6] : memref<48x96xf32, #tpu.memory_space<vmem>>, vector<48x96xf32>
    tpu.vector_store %arg4[%c0_5, %c0_6], %5 {strides = array<i32>} : memref<48x96xf32, #tpu.memory_space<vmem>>, vector<48x96xf32>,
    return
  }
  func.func @transform_0(%arg0: i32) -> (i32, i32) {
    %c0_i32 = arith.constant 0 : i32
    %c0_i32_0 = arith.constant 0 : i32
    return %arg0, %c0_i32 : i32, i32
  }
  func.func @transform_1(%arg0: i32) -> (i32, i32) {
    %c0_i32 = arith.constant 0 : i32
    %c0_i32_0 = arith.constant 0 : i32
    %c0_i32_1 = arith.constant 0 : i32
    return %c0_i32, %c0_i32_0 : i32, i32
  }
  func.func @transform_2(%arg0: i32) -> (i32, i32) {
    %c0_i32 = arith.constant 0 : i32
    %c0_i32_0 = arith.constant 0 : i32
    %c0_i32_1 = arith.constant 0 : i32
    return %c0_i32, %c0_i32_0 : i32, i32
  }
  func.func @transform_3(%arg0: i32) -> (i32, i32) {
    %c0_i32 = arith.constant 0 : i32
    %c0_i32_0 = arith.constant 0 : i32
    return %arg0, %c0_i32 : i32, i32
  }
}

</mosaic_0001>

<bundles_post_ra>
// kernel: tpu_custom_call.1
= control target key start
LH: loop header
LB: loop body
LE: loop exit
PB: predicated region body
PF: predicated region fallthrough
CT: control target
= control target key end

     0   :  { %s227_s0 = inlined_call_operand.vmem [shape: f32[48,32], index: 0, kind: input, shape index: {}]   ;;  %s228_s1 = inlined_call_operand.vmem [shape: f32[32,96], index: 1, kind: input, shape index: {}]   ;;  %s229_s2 = inlined_call_operand.vmem [shape: f32[1,96], index: 2, kind: input, shape index: {}]   ;;  %s230_s3 = inlined_call_operand.hbm [shape: f32[48,96], index: 3, kind: output, shape index: {}]  }
   0x1   :  { %v24_v0 = vld [vmem:[%s228_s1 + $0x18] sm:$0xff]  ;;  %v23_v1 = vld [vmem:[%s228_s1 + $0x10] sm:$0xff]  ;;  %v22_v2 = vld [vmem:[%s228_s1 + $0x8] sm:$0xff] }
   0x2   :  { %116 = vmatpush.msra.mxu3 %v24_v0  ;;  %114 = vmatpush.msra.mxu1 %v24_v0  ;;  %v21_v3 = vld [vmem:[%s228_s1] sm:$0xff] }
   0x3   :  { %115 = vmatpush.msra.mxu2 %v24_v0  ;;  %60 = vmatpush.msra.mxu0 %v24_v0 }
   0x4   :  { %119 = vmatpush.msra.mxu3 %v23_v1  ;;  %117 = vmatpush.msra.mxu1 %v23_v1 }
   0x5   :  { %118 = vmatpush.msra.mxu2 %v23_v1  ;;  %61 = vmatpush.msra.mxu0 %v23_v1 }
   0x6   :  { %8 = vsyncpa [#allocation3], 0  ;;  %122 = vmatpush.msra.mxu3 %v22_v2  ;;  %v19_v4 = vld [vmem:[%s227_s0 + $0x20] sm:$0xff]  ;;  %vm29_vm0 = vcmask 261120   ;;  %120 = vmatpush.msra.mxu1 %v22_v2  ;;  %v16_v5 = vld [vmem:[%s227_s0 + $0x8] sm:$0xff]  ;;  %vm83_vm1 = vcmask 785408  }
   0x7   :  { %121 = vmatpush.msra.mxu2 %v22_v2  ;;  %62 = vmatpush.msra.mxu0 %v22_v2  ;;  %v18_v6 = vld [vmem:[%s227_s0 + $0x18] sm:$0xff]  ;;  %v15_v7 = vld [vmem:[%s227_s0] sm:$0xff]  ;;  %v20_v8 = vld [vmem:[%s227_s0 + $0x28] sm:$0xff]  ;;  %s96_s8 = sshll.u32 %s230_s3, 4  ;;  %s157_s9 = smov 128   ;;  %s97_s8 = int_to_ptr.hbm [resolvable:$true] %s96_s8 }
   0x8   :  { %125 = vmatpush.msra.mxu3 %v21_v3  ;;  %123 = vmatpush.msra.mxu1 %v21_v3  ;;  %v17_v9 = vld [vmem:[%s227_s0 + $0x10] sm:$0xff]  ;;  %v129_v10 = vld [vmem:[%s229_s2] ss:$0 sm:$0xff]  ;;  %s156_s0 = smov [#allocation2]   ;;  %s158_s10 = smov 8  }
   0x9   :  { %112 = vmatmul.msk.f32.vlgmr.msra.gmra.mxu3 %vm29_vm0, %v19_v4  ;;  %109 = vmatmul.msk.f32.vlgmr.msra.gmra.mxu1 %vm29_vm0, %v16_v5  ;;  %s94_s2 = sshll.u32 %s156_s0, 4  ;;  %s95_s2 = int_to_ptr.vmem [resolvable:$true] %s94_s2 }
   0xa   :  { %124 = vmatpush.msra.mxu2 %v21_v3  ;;  %63 = vmatpush.msra.mxu0 %v21_v3 }
   0xb   :  { %111 = vmatmul.msk.f32.vlgmr.msra.gmra.mxu2 %vm29_vm0, %v18_v6  ;;  %108 = vmatmul.msk.f32.vlgmr.msra.gmra.mxu0 %vm29_vm0, %v15_v7 }
  0x11   :  { %113 = vmatmul.msk.f32.gmra.mxu3 %vm29_vm0, %v20_v8  ;;  %110 = vmatmul.msk.f32.gmra.mxu1 %vm29_vm0, %v17_v9 }
  0x86   :  { %v68_v11 = vpop.f32.mrf.mxu1 }
  0x87   :  { %v69_v12 = vadd.f32 %v129_v10, %v68_v11 }
  0x88   :  { %v65_v13 = vpop.f32.mrf.mxu0 }
  0x89   :  { %85 = vst.msk [vmem:[#allocation2 + $0x8] sm:$0xff] %vm83_vm1, %v69_v12  ;;  %v66_v14 = vadd.f32 %v129_v10, %v65_v13 }
  0x8b   :  { %84 = vst.msk [vmem:[#allocation2] sm:$0xff] %vm83_vm1, %v66_v14 }
  0x8c   :  { %v77_v15 = vpop.f32.mrf.mxu3 }
  0x8d   :  { %v78_v16 = vadd.f32 %v129_v10, %v77_v15 }
  0x8e   :  { %v71_v17 = vpop.f32.mrf.mxu1  ;;  %v74_v18 = vpop.f32.mrf.mxu2 }
  0x8f   :  { %88 = vst.msk [vmem:[#allocation2 + $0x20] sm:$0xff] %vm83_vm1, %v78_v16  ;;  %v72_v19 = vadd.f32 %v129_v10, %v71_v17  ;;  %v75_v20 = vadd.f32 %v129_v10, %v74_v18 }
  0x91   :  { %86 = vst.msk [vmem:[#allocation2 + $0x10] sm:$0xff] %vm83_vm1, %v72_v19 }
  0x92   :  { %87 = vst.msk [vmem:[#allocation2 + $0x18] sm:$0xff] %vm83_vm1, %v75_v20 }
  0x94   :  { %v80_v21 = vpop.f32.mrf.mxu3 }
  0x95   :  { %v81_v22 = vadd.f32 %v129_v10, %v80_v21 }
  0x97   :  { %89 = vst.msk [vmem:[#allocation2 + $0x28] sm:$0xff] %vm83_vm1, %v81_v22 }
  0x98   :  { %102 = dma.vmem_to_hbm [thread:$0]  %s95_s2, 768, %s97_s8, [#allocation3], %s157_s9, %s157_s9, %s158_s10  }
  0x99   :  { %154 = dma.done.wait [#allocation3], 768  }
  0x9a   :  { %155 = vsyncadd [#allocation3], 4294966528 }
  0x9b   :  { %107 = vsyncpa [#allocation3], 1 }

</bundles_post_ra>
